<compile_context>
chip_gen: v6e
topology: v6e:2x2x1
jax: 0.10.0
libtpu: 0.0.40
codegen_flags: <defaults>
</compile_context>

<pallas_src>
import functools

import jax
import jax.numpy as jnp
from jax import lax
from jax.experimental import pallas as pl
from jax.experimental.pallas import tpu as pltpu

EPS = 1e-5


def _round_up(a, b):
    return ((a + b - 1) // b) * b


def _cdiv(a, b):
    return -(-a // b)


# ---------------------------------------------------------------------------
# Kernels
# ---------------------------------------------------------------------------
def _conv_stats_kernel(pt_ref, w_ref, conv_ref, sum_ref, sq_ref):
    """Pass A: conv tile (MXU) + per-core per-channel sum / sum-of-squares.

    pt_ref  : (K, TM)     bf16 transposed im2col patches (lanes = out positions)
    w_ref   : (C_out, K)  bf16 conv weight, resident across the grid
    conv_ref: (C_out, TM) bf16 conv result tile (lane-dense store)
    sum_ref : (C_out, 1)  f32  per-core accumulated sum   (same block over i)
    sq_ref  : (C_out, 1)  f32  per-core accumulated sumsq (same block over i)
    """
    i = pl.program_id(1)

    conv = jnp.dot(w_ref[...], pt_ref[...], preferred_element_type=jnp.float32)
    conv_ref[...] = conv.astype(conv_ref.dtype)

    @pl.when(i == 0)
    def _():
        sum_ref[...] = jnp.zeros_like(sum_ref)
        sq_ref[...] = jnp.zeros_like(sq_ref)

    sum_ref[...] += jnp.sum(conv, axis=1, keepdims=True)
    sq_ref[...] += jnp.sum(conv * conv, axis=1, keepdims=True)


def _bn_relu_kernel(conv_ref, scale_ref, shift_ref, out_ref):
    """Pass B: y = relu(conv * scale + shift), per-channel scale/shift.

    conv_ref : (C_out, TM) bf16; upcast to f32 before affine.
    out_ref  : (C_out, TM) f32 slice of the (N, C_out, hw_p) output.
    """
    y = conv_ref[...].astype(jnp.float32) * scale_ref[...] + shift_ref[...]
    out_ref[...] = jnp.maximum(y, 0.0).astype(out_ref.dtype)


# ---------------------------------------------------------------------------
# Host-side helpers
# ---------------------------------------------------------------------------
def _im2col_t(x_bf16, kernel_size, stride, padding, hw_pad):
    """bf16 x: (N, C_in, H, W) -> (C_in*k*k, N*hw_pad).

    Row order (C_in, kh, kw) matches weight.reshape(C_out, C_in*k*k); columns
    are (n, oh*Wo + ow) with per-image zero padding of Ho*Wo up to hw_pad.
    """
    n, c_in, h, w = x_bf16.shape
    ho = (h + 2 * padding - kernel_size) // stride + 1
    wo = (w + 2 * padding - kernel_size) // stride + 1
    x_pad = jnp.pad(x_bf16,
                    ((0, 0), (0, 0), (padding, padding), (padding, padding)))
    taps = []
    for kh in range(kernel_size):
        for kw in range(kernel_size):
            taps.append(
                x_pad[:, :,
                      kh:kh + stride * (ho - 1) + 1:stride,
                      kw:kw + stride * (wo - 1) + 1:stride])  # (N, C_in, Ho, Wo)
    p = jnp.stack(taps, axis=2)                 # (N, C_in, k*k, Ho, Wo)
    p = p.transpose(1, 2, 0, 3, 4)              # (C_in, k*k, N, Ho, Wo)
    p = p.reshape(c_in * kernel_size * kernel_size, n, ho * wo)
    p = jnp.pad(p, ((0, 0), (0, 0), (0, hw_pad - ho * wo)))
    return p.reshape(c_in * kernel_size * kernel_size, n * hw_pad)


def _pick_tile(k_dim, c_out, hw, requested, budget_bytes=12 << 20):
    """Pick a lane tile width (multiple of 128) under a VMEM scratch budget."""
    requested = max(128, (requested // 128) * 128)
    # Double-buffered per-column bytes, worst of the two passes:
    #   Pass A: bf16 patch column (2*K) + bf16 conv column (2*C_out)
    #   Pass B: bf16 conv column (2*C_out) + f32 out column (4*C_out)
    per_col = 2 * max(2 * k_dim + 2 * c_out, 6 * c_out)
    cap = max(128, (budget_bytes // per_col) // 128 * 128)
    bound = max(128, min(requested, cap))
    hw128 = _round_up(hw, 128)
    n_blocks = _cdiv(hw128, bound)
    tm = _round_up(_cdiv(hw128, n_blocks), 128)
    return tm, n_blocks


# ---------------------------------------------------------------------------
# ConvBlock forward
# ---------------------------------------------------------------------------
@functools.partial(
    jax.jit, static_argnames=("kernel_size", "stride", "padding", "tile_m"))
def conv_block_forward(x, weight, gamma, beta, *, kernel_size=3, stride=2,
                       padding=1, tile_m=8192):
    """x: (N, C_in, H, W); weight: (C_out, C_in, kh, kw); gamma/beta: (C_out,)."""
    n, c_in, h, w = x.shape
    c_out = weight.shape[0]
    k_dim = c_in * kernel_size * kernel_size

    ho = (h + 2 * padding - kernel_size) // stride + 1
    wo = (w + 2 * padding - kernel_size) // stride + 1
    hw = ho * wo

    tm, n_blocks = _pick_tile(k_dim, c_out, hw, tile_m)
    hw_p = tm * n_blocks                      # per-image padded Ho*Wo

    # Single bf16 materialization of the transposed patch matrix.
    pt = _im2col_t(x.astype(jnp.bfloat16), kernel_size, stride, padding, hw_p)
    w2d = weight.reshape(c_out, k_dim).astype(jnp.bfloat16)   # (C_out, K)

    # Split M tiles across two cores (v7x megacore); pad to an even tile count.
    tiles_total = _round_up(n * n_blocks, 2)
    tiles_per_core = tiles_total // 2
    mp = tiles_total * tm
    if mp > n * hw_p:
        pt = jnp.pad(pt, ((0, 0), (0, mp - n * hw_p)))

    # ---- Pass A: conv (bf16 intermediate) + global BN statistics -----------
    cost_a = pl.CostEstimate(
        flops=2 * mp * k_dim * c_out,
        transcendentals=0,
        bytes_accessed=(pt.size * 2 + w2d.size * 2
                        + mp * c_out * 2 + 2 * 2 * c_out * 4))

    conv2d, s1, s2 = pl.pallas_call(
        _conv_stats_kernel,
        grid=(2, tiles_per_core),
        in_specs=[
            pl.BlockSpec((k_dim, tm), lambda c, i: (0, c * tiles_per_core + i)),
            pl.BlockSpec((c_out, k_dim), lambda c, i: (0, 0)),
        ],
        out_specs=[
            pl.BlockSpec((c_out, tm), lambda c, i: (0, c * tiles_per_core + i)),
            pl.BlockSpec((None, c_out, 1), lambda c, i: (c, 0, 0)),
            pl.BlockSpec((None, c_out, 1), lambda c, i: (c, 0, 0)),
        ],
        out_shape=[
            jax.ShapeDtypeStruct((c_out, mp), jnp.bfloat16),
            jax.ShapeDtypeStruct((2, c_out, 1), jnp.float32),
            jax.ShapeDtypeStruct((2, c_out, 1), jnp.float32),
        ],
        compiler_params=pltpu.CompilerParams(
            dimension_semantics=("parallel", "arbitrary")),
        cost_estimate=cost_a,
    )(pt, w2d)

    # ---- Fold BN (train-mode batch stats) into per-channel scale/shift -----
    # Zero-padded columns contribute exactly 0 to both sums; divide by the true
    # element count. Biased variance matches PyTorch BN normalization.
    m_true = n * hw
    s1 = jnp.sum(s1, axis=0)                                   # (C_out, 1)
    s2 = jnp.sum(s2, axis=0)
    mean = s1 / m_true
    var = jnp.maximum(s2 / m_true - mean * mean, 0.0)
    inv_std = lax.rsqrt(var + EPS)
    scale = gamma.reshape(c_out, 1).astype(jnp.float32) * inv_std
    shift = beta.reshape(c_out, 1).astype(jnp.float32) - mean * scale

    # ---- Pass B: normalize + ReLU, written directly in (N, C_out, HW) ------
    cost_b = pl.CostEstimate(
        flops=2 * n * hw_p * c_out,
        transcendentals=0,
        bytes_accessed=n * hw_p * c_out * 2 + n * hw_p * c_out * 4
                       + 4 * c_out * 4)

    out3d = pl.pallas_call(
        _bn_relu_kernel,
        grid=(n, n_blocks),
        in_specs=[
            pl.BlockSpec((c_out, tm), lambda b, j: (0, b * n_blocks + j)),
            pl.BlockSpec((c_out, 1), lambda b, j: (0, 0)),
            pl.BlockSpec((c_out, 1), lambda b, j: (0, 0)),
        ],
        out_specs=pl.BlockSpec((None, c_out, tm), lambda b, j: (b, 0, j)),
        out_shape=jax.ShapeDtypeStruct((n, c_out, hw_p), jnp.float32),
        compiler_params=pltpu.CompilerParams(
            dimension_semantics=("parallel", "parallel")),
        cost_estimate=cost_b,
    )(conv2d, scale, shift)

    # Free reshape to NCHW (no transpose); slice only if HW was padded.
    out = out3d[:, :, :hw].reshape(n, c_out, ho, wo)
    return out


# ---------------------------------------------------------------------------
# Reference (mirrors the kernel's mixed-precision policy: bf16 conv inputs,
# f32 accumulation and f32 BN statistics, bf16 conv intermediate).
# ---------------------------------------------------------------------------
def _reference(x, weight, gamma, beta, *, stride=2, padding=1):
    conv = lax.conv_general_dilated(
        x.astype(jnp.bfloat16), weight.astype(jnp.bfloat16),
        window_strides=(stride, stride),
        padding=[(padding, padding), (padding, padding)],
        dimension_numbers=("NCHW", "OIHW", "NCHW"),
        preferred_element_type=jnp.float32)
    mean = conv.mean(axis=(0, 2, 3), keepdims=True)
    var = conv.var(axis=(0, 2, 3), keepdims=True)   # biased, like PyTorch BN
    scale = gamma.reshape(1, -1, 1, 1) / jnp.sqrt(var + EPS)
    shift = beta.reshape(1, -1, 1, 1) - mean * scale
    conv_bf = conv.astype(jnp.bfloat16).astype(jnp.float32)
    return jnp.maximum(conv_bf * scale + shift, 0.0)


if __name__ == "__main__":
    key = jax.random.PRNGKey(0)
    k_x, k_w, k_g, k_b = jax.random.split(key, 4)

    N, C_in, H, W = 2, 4, 32, 32
    C_out, K_SZ, STRIDE, PAD = 8, 3, 2, 1

    x = jax.random.normal(k_x, (N, C_in, H, W), dtype=jnp.float32)
    fan_in = C_in * K_SZ * K_SZ
    weight = jax.random.normal(k_w, (C_out, C_in, K_SZ, K_SZ),
                               dtype=jnp.float32) / jnp.sqrt(fan_in)
    gamma = 1.0 + 0.1 * jax.random.normal(k_g, (C_out,), dtype=jnp.float32)
    beta = 0.1 * jax.random.normal(k_b, (C_out,), dtype=jnp.float32)

    # tile_m=128 is TEST-ONLY: exercises the multi-tile stats accumulation and
    # the per-core split.  Production default is tile_m=8192 (VMEM-budgeted).
    out = conv_block_forward(x, weight, gamma, beta,
                             kernel_size=K_SZ, stride=STRIDE, padding=PAD,
                             tile_m=128)
    out = jax.block_until_ready(out)

    ref = _reference(x, weight, gamma, beta, stride=STRIDE, padding=PAD)
    assert out.shape == (N, C_out, H // STRIDE, W // STRIDE), out.shape
    err = float(jnp.max(jnp.abs(out - ref)))
    assert jnp.allclose(out, ref, atol=2e-2, rtol=2e-2), err

    print("KERNEL_OK")
</pallas_src>

<mosaic_0001>
module attributes {stable_mosaic.version = 11 : i64} {
  func.func @_conv_stats_kernel(%arg0: i32, %arg1: i32, %arg2: memref<36x128xbf16, #tpu.memory_space<vmem>>, %arg3: memref<8x36xbf16, #tpu.memory_space<vmem>>, %arg4: memref<8x128xbf16, #tpu.memory_space<vmem>>, %arg5: memref<1x8x1xf32, #tpu.memory_space<vmem>>, %arg6: memref<1x8x1xf32, #tpu.memory_space<vmem>>) attributes {dimension_semantics = [#tpu.dimension_semantics<parallel>, #tpu.dimension_semantics<arbitrary>], iteration_bounds = array<i64: 2, 2>, scalar_prefetch = 0 : i64, scratch_operands = 0 : i64, tpu.core_type = #tpu.core_type<tc>, window_params = [{transform_indices = @transform_0, window_bounds = array<i64: 36, 128>}, {pipeline_mode = #tpu.pipeline_mode<synchronous>, transform_indices = @transform_1, window_bounds = array<i64: 8, 36>}, {transform_indices = @transform_2, window_bounds = array<i64: 8, 128>}, {transform_indices = @transform_3, window_bounds = array<i64: 1, 8, 1>}, {transform_indices = @transform_4, window_bounds = array<i64: 1, 8, 1>}]} {
    %c0 = arith.constant 0 : index
    %c0_0 = arith.constant 0 : index
    %0 = vector.load %arg3[%c0, %c0_0] : memref<8x36xbf16, #tpu.memory_space<vmem>>, vector<8x36xbf16>
    %c0_1 = arith.constant 0 : index
    %c0_2 = arith.constant 0 : index
    %1 = vector.load %arg2[%c0_1, %c0_2] : memref<36x128xbf16, #tpu.memory_space<vmem>>, vector<36x128xbf16>
    %cst = arith.constant dense<0.000000e+00> : vector<8x128xf32>
    %2 = tpu.matmul %0, %1, %cst {dimension_numbers = #tpu.dot_dimension_numbers<[1], [0], [0], [1], [0, 0, 1, 1], [], []>} : vector<8x36xbf16>, vector<36x128xbf16>, vector<8x128xf32> -> vector<8x128xf32>
    %3 = arith.truncf %2 : vector<8x128xf32> to vector<8x128xbf16>
    %c0_3 = arith.constant 0 : index
    %c0_4 = arith.constant 0 : index
    %4 = vector.load %arg4[%c0_3, %c0_4] : memref<8x128xbf16, #tpu.memory_space<vmem>>, vector<8x128xbf16>
    tpu.vector_store %arg4[%c0_3, %c0_4], %3 {strides = array<i32>} : memref<8x128xbf16, #tpu.memory_space<vmem>>, vector<8x128xbf16>,
    %c0_i32 = arith.constant 0 : i32
    %5 = arith.cmpi eq, %arg1, %c0_i32 : i32
    %6 = arith.extui %5 : i1 to i32
    %c0_i32_5 = arith.constant 0 : i32
    %7 = arith.cmpi ne, %6, %c0_i32_5 : i32
    scf.if %7 {
      %cst_20 = arith.constant 0.000000e+00 : f32
      %25 = vector.broadcast %cst_20 : f32 to vector<8x1xf32>
      %c0_21 = arith.constant 0 : index
      %c0_22 = arith.constant 0 : index
      %c0_23 = arith.constant 0 : index
      %26 = vector.load %arg5[%c0_21, %c0_22, %c0_23] : memref<1x8x1xf32, #tpu.memory_space<vmem>>, vector<1x8x1xf32>
      %27 = vector.shape_cast %26 : vector<1x8x1xf32> to vector<8x1xf32>
      %28 = vector.shape_cast %25 : vector<8x1xf32> to vector<1x8x1xf32>
      tpu.vector_store %arg5[%c0_21, %c0_22, %c0_23], %28 {strides = array<i32>} : memref<1x8x1xf32, #tpu.memory_space<vmem>>, vector<1x8x1xf32>,
      %cst_24 = arith.constant 0.000000e+00 : f32
      %29 = vector.broadcast %cst_24 : f32 to vector<8x1xf32>
      %c0_25 = arith.constant 0 : index
      %c0_26 = arith.constant 0 : index
      %c0_27 = arith.constant 0 : index
      %30 = vector.load %arg6[%c0_25, %c0_26, %c0_27] : memref<1x8x1xf32, #tpu.memory_space<vmem>>, vector<1x8x1xf32>
      %31 = vector.shape_cast %30 : vector<1x8x1xf32> to vector<8x1xf32>
      %32 = vector.shape_cast %29 : vector<8x1xf32> to vector<1x8x1xf32>
      tpu.vector_store %arg6[%c0_25, %c0_26, %c0_27], %32 {strides = array<i32>} : memref<1x8x1xf32, #tpu.memory_space<vmem>>, vector<1x8x1xf32>,
    } else {
    }
    %c0_6 = arith.constant 0 : index
    %c0_7 = arith.constant 0 : index
    %c0_8 = arith.constant 0 : index
    %8 = vector.load %arg5[%c0_6, %c0_7, %c0_8] : memref<1x8x1xf32, #tpu.memory_space<vmem>>, vector<1x8x1xf32>
    %9 = vector.shape_cast %8 : vector<1x8x1xf32> to vector<8x1xf32>
    %cst_9 = arith.constant dense<0.000000e+00> : vector<8xf32>
    %10 = vector.multi_reduction <add>, %2, %cst_9 [1] : vector<8x128xf32> to vector<8xf32>
    %11 = vector.shape_cast %10 : vector<8xf32> to vector<8x1xf32>
    %12 = arith.addf %9, %11 : vector<8x1xf32>
    %c0_10 = arith.constant 0 : index
    %c0_11 = arith.constant 0 : index
    %c0_12 = arith.constant 0 : index
    %13 = vector.load %arg5[%c0_10, %c0_11, %c0_12] : memref<1x8x1xf32, #tpu.memory_space<vmem>>, vector<1x8x1xf32>
    %14 = vector.shape_cast %13 : vector<1x8x1xf32> to vector<8x1xf32>
    %15 = vector.shape_cast %12 : vector<8x1xf32> to vector<1x8x1xf32>
    tpu.vector_store %arg5[%c0_10, %c0_11, %c0_12], %15 {strides = array<i32>} : memref<1x8x1xf32, #tpu.memory_space<vmem>>, vector<1x8x1xf32>,
    %c0_13 = arith.constant 0 : index
    %c0_14 = arith.constant 0 : index
    %c0_15 = arith.constant 0 : index
    %16 = vector.load %arg6[%c0_13, %c0_14, %c0_15] : memref<1x8x1xf32, #tpu.memory_space<vmem>>, vector<1x8x1xf32>
    %17 = vector.shape_cast %16 : vector<1x8x1xf32> to vector<8x1xf32>
    %18 = arith.mulf %2, %2 : vector<8x128xf32>
    %cst_16 = arith.constant dense<0.000000e+00> : vector<8xf32>
    %19 = vector.multi_reduction <add>, %18, %cst_16 [1] : vector<8x128xf32> to vector<8xf32>
    %20 = vector.shape_cast %19 : vector<8xf32> to vector<8x1xf32>
    %21 = arith.addf %17, %20 : vector<8x1xf32>
    %c0_17 = arith.constant 0 : index
    %c0_18 = arith.constant 0 : index
    %c0_19 = arith.constant 0 : index
    %22 = vector.load %arg6[%c0_17, %c0_18, %c0_19] : memref<1x8x1xf32, #tpu.memory_space<vmem>>, vector<1x8x1xf32>
    %23 = vector.shape_cast %22 : vector<1x8x1xf32> to vector<8x1xf32>
    %24 = vector.shape_cast %21 : vector<8x1xf32> to vector<1x8x1xf32>
    tpu.vector_store %arg6[%c0_17, %c0_18, %c0_19], %24 {strides = array<i32>} : memref<1x8x1xf32, #tpu.memory_space<vmem>>, vector<1x8x1xf32>,
    return
  }
  func.func @transform_0(%arg0: i32, %arg1: i32) -> (i32, i32) {
    %c2_i32 = arith.constant 2 : i32
    %0 = arith.muli %arg0, %c2_i32 : i32
    %1 = arith.addi %0, %arg1 : i32
    %c0_i32 = arith.constant 0 : i32
    %c0_i32_0 = arith.constant 0 : i32
    return %c0_i32, %1 : i32, i32
  }
  func.func @transform_1(%arg0: i32, %arg1: i32) -> (i32, i32) {
    %c0_i32 = arith.constant 0 : i32
    %c0_i32_0 = arith.constant 0 : i32
    %c0_i32_1 = arith.constant 0 : i32
    return %c0_i32, %c0_i32_0 : i32, i32
  }
  func.func @transform_2(%arg0: i32, %arg1: i32) -> (i32, i32) {
    %c2_i32 = arith.constant 2 : i32
    %0 = arith.muli %arg0, %c2_i32 : i32
    %1 = arith.addi %0, %arg1 : i32
    %c0_i32 = arith.constant 0 : i32
    %c0_i32_0 = arith.constant 0 : i32
    return %c0_i32, %1 : i32, i32
  }
  func.func @transform_3(%arg0: i32, %arg1: i32) -> (i32, i32, i32) {
    %c0_i32 = arith.constant 0 : i32
    %c0_i32_0 = arith.constant 0 : i32
    %c0_i32_1 = arith.constant 0 : i32
    return %arg0, %c0_i32, %c0_i32_0 : i32, i32, i32
  }
  func.func @transform_4(%arg0: i32, %arg1: i32) -> (i32, i32, i32) {
    %c0_i32 = arith.constant 0 : i32
    %c0_i32_0 = arith.constant 0 : i32
    %c0_i32_1 = arith.constant 0 : i32
    return %arg0, %c0_i32, %c0_i32_0 : i32, i32, i32
  }
}

module attributes {stable_mosaic.version = 11 : i64} {
  func.func @_bn_relu_kernel(%arg0: i32, %arg1: i32, %arg2: memref<8x128xbf16, #tpu.memory_space<vmem>>, %arg3: memref<8x1xf32, #tpu.memory_space<vmem>>, %arg4: memref<8x1xf32, #tpu.memory_space<vmem>>, %arg5: memref<1x8x128xf32, #tpu.memory_space<vmem>>) attributes {dimension_semantics = [#tpu.dimension_semantics<parallel>, #tpu.dimension_semantics<parallel>], iteration_bounds = array<i64: 2, 2>, scalar_prefetch = 0 : i64, scratch_operands = 0 : i64, tpu.core_type = #tpu.core_type<tc>, window_params = [{transform_indices = @transform_0, window_bounds = array<i64: 8, 128>}, {pipeline_mode = #tpu.pipeline_mode<synchronous>, transform_indices = @transform_1, window_bounds = array<i64: 8, 1>}, {pipeline_mode = #tpu.pipeline_mode<synchronous>, transform_indices = @transform_2, window_bounds = array<i64: 8, 1>}, {transform_indices = @transform_3, window_bounds = array<i64: 1, 8, 128>}]} {
    %c0 = arith.constant 0 : index
    %c0_0 = arith.constant 0 : index
    %0 = vector.load %arg2[%c0, %c0_0] : memref<8x128xbf16, #tpu.memory_space<vmem>>, vector<8x128xbf16>
    %1 = arith.extf %0 : vector<8x128xbf16> to vector<8x128xf32>
    %c0_1 = arith.constant 0 : index
    %c0_2 = arith.constant 0 : index
    %2 = vector.load %arg3[%c0_1, %c0_2] : memref<8x1xf32, #tpu.memory_space<vmem>>, vector<8x1xf32>
    %3 = vector.broadcast %2 : vector<8x1xf32> to vector<8x128xf32>
    %4 = arith.mulf %1, %3 : vector<8x128xf32>
    %c0_3 = arith.constant 0 : index
    %c0_4 = arith.constant 0 : index
    %5 = vector.load %arg4[%c0_3, %c0_4] : memref<8x1xf32, #tpu.memory_space<vmem>>, vector<8x1xf32>
    %6 = vector.broadcast %5 : vector<8x1xf32> to vector<8x128xf32>
    %7 = arith.addf %4, %6 : vector<8x128xf32>
    %cst = arith.constant 0.000000e+00 : f32
    %8 = vector.broadcast %cst : f32 to vector<8x128xf32>
    %9 = arith.maximumf %7, %8 : vector<8x128xf32>
    %c0_5 = arith.constant 0 : index
    %c0_6 = arith.constant 0 : index
    %c0_7 = arith.constant 0 : index
    %10 = vector.load %arg5[%c0_5, %c0_6, %c0_7] : memref<1x8x128xf32, #tpu.memory_space<vmem>>, vector<1x8x128xf32>
    %11 = vector.shape_cast %10 : vector<1x8x128xf32> to vector<8x128xf32>
    %12 = vector.shape_cast %9 : vector<8x128xf32> to vector<1x8x128xf32>
    tpu.vector_store %arg5[%c0_5, %c0_6, %c0_7], %12 {strides = array<i32>} : memref<1x8x128xf32, #tpu.memory_space<vmem>>, vector<1x8x128xf32>,
    return
  }
  func.func @transform_0(%arg0: i32, %arg1: i32) -> (i32, i32) {
    %c2_i32 = arith.constant 2 : i32
    %0 = arith.muli %arg0, %c2_i32 : i32
    %1 = arith.addi %0, %arg1 : i32
    %c0_i32 = arith.constant 0 : i32
    %c0_i32_0 = arith.constant 0 : i32
    return %c0_i32, %1 : i32, i32
  }
  func.func @transform_1(%arg0: i32, %arg1: i32) -> (i32, i32) {
    %c0_i32 = arith.constant 0 : i32
    %c0_i32_0 = arith.constant 0 : i32
    %c0_i32_1 = arith.constant 0 : i32
    return %c0_i32, %c0_i32_0 : i32, i32
  }
  func.func @transform_2(%arg0: i32, %arg1: i32) -> (i32, i32) {
    %c0_i32 = arith.constant 0 : i32
    %c0_i32_0 = arith.constant 0 : i32
    %c0_i32_1 = arith.constant 0 : i32
    return %c0_i32, %c0_i32_0 : i32, i32
  }
  func.func @transform_3(%arg0: i32, %arg1: i32) -> (i32, i32, i32) {
    %c0_i32 = arith.constant 0 : i32
    %c0_i32_0 = arith.constant 0 : i32
    return %arg0, %c0_i32, %arg1 : i32, i32, i32
  }
}

</mosaic_0001>

<bundles_post_ra>
// kernel: conv_block_forward.3
= control target key start
LH: loop header
LB: loop body
LE: loop exit
PB: predicated region body
PF: predicated region fallthrough
CT: control target
= control target key end

     0   :  { %s416_s12 = smov 0   ;;  %s418_s13 = smov 0   ;;  %s478_s0 = inlined_call_operand.vmem [shape: bf16[8,512], index: 0, kind: input, shape index: {}]   ;;  %s479_s1 = inlined_call_operand.vmem [shape: f32[8,1], index: 1, kind: input, shape index: {}]   ;;  %s480_s2 = inlined_call_operand.vmem [shape: f32[8,1], index: 2, kind: input, shape index: {}]   ;;  %s481_s3 = inlined_call_operand.vmem [shape: f32[2,8,256], index: 3, kind: output, shape index: {}]  }
   0x1   :  { %s420_s14 = smov 0   ;;  %s422_s15 = smov 0  }
   0x2   :  { %s424_s16 = smov 0  }
   0x3 LB: > { %s22_s17 = sadd.s32 1, %s385_s14  ;;  %s25_s18 = sadd.s32 1, %s389_s15  ;;  %s393_s16 = sphi %s424_s16, %s13_s16   ;;  %s389_s15 = sphi %s422_s15, %s485_s15   ;;  %s385_s14 = sphi %s420_s14, %s484_s14   ;;  %s381_s13 = sphi %s418_s13, %s483_s13   ;;  %s377_s12 = sphi %s416_s12, %s482_s12  }
   0x4   : > { %p23_p0 = scmp.ge.s32.totalorder %s22_s17, 2  ;;  %p306_p1 = scmp.ge.s32.totalorder %s393_s16, 1 }
   0x5   : > { %p158_p2 = scmp.lt.s32.totalorder %s393_s16, 5 }
   0x6   : > { %s487_s17 = smov (%p23_p0, %s22_s17), 0  ;;  %s489_s18 = smov (!%p23_p0, %s25_s18), %s389_s15 }
   0x7   : > { %p159_p3 = pnand %p306_p1, %p158_p2  ;;  %p27_p4 = scmp.ge.s32.totalorder %s489_s18, 2 }
   0x8   : > { %s307_s23 = sshll.u32 (!%p159_p3), %s381_s13, 1  ;;  %p194_p6 = scmp.lt.s32.totalorder (!%p159_p3), %s381_s13, 1 }
   0x9   : > { %s491_s18 = smov (%p27_p4, %s489_s18), 0  ;;  %162 = sbr.rel (%p159_p3) target bundleno = 149 (0x95), region = 32 }
   0xa   : > { %s187_s24 = sadd.s32 (!%p159_p3), %s377_s12, %s307_s23  ;;  %p196_p7 = scmp.lt.s32.totalorder (!%p159_p3), %s377_s12, 1 }
   0xb   : > { %p188_p5 = scmp.lt.s32.totalorder (!%p159_p3), %s187_s24, 3 }
   0xe   : > { %v204_v0 = vld [vmem:[%s479_s1] sm:$0xff]  ;;  %v395_v1 = vmov 0   ;;  %s493_s24 = smov (!%p188_p5, %s187_s24), 3  ;;  %s495_s13 = smov (!%p194_p6, %s381_s13), 1 }
   0xf   : > { %354 = vset.pattern.permute.xlu0 %v395_v1  ;;  %v211_v2 = vld [vmem:[%s480_s2] sm:$0xff]  ;;  %s308_s25 = sshll.u32 %s493_s24, 2  ;;  %s497_s12 = smov (!%p196_p7, %s377_s12), 1 }
  0x10   : > { %207 = vperm.xlu0 %354, %v204_v0   ;;  %s191_s28 = scalar_lea.vmem %s478_s0, %s308_s25  ;;  %s309_s29 = sshll.u32 %s495_s13, 1 }
  0x11   : > { %v202_v3 = vld [vmem:[%s191_s28] sm:$0xf]  ;;  %s199_s30 = sadd.s32 %s309_s29, %s497_s12 }
  0x12   : > { %v203_v4 = vunpack.c.l.bf16 %v202_v3  ;;  %s310_s4 = sshll.u32 %s199_s30, 3 }
  0x13   : > { %s201_s7 = scalar_lea.vmem %s481_s3, %s310_s4 }
  0x14   : > { %214 = vperm.xlu0 %354, %v211_v2  }
  0x8b   : > { %v208_v5 = vpop.permute.xlu0 %207 }
  0x8c   : > { %v210_v6 = vmul.f32 %v208_v5, %v203_v4 }
  0x8f   : > { %v215_v7 = vpop.permute.xlu0 %214 }
  0x90   : > { %v217_v8 = vadd.f32 %v215_v7, %v210_v6 }
  0x92   : > { %v218_v9 = vmax.f32 %v217_v8, 0.0 }
  0x94   : > { %219 = vst [vmem:[%s201_s7] sm:$0xff] %v218_v9 }
  0x95 PF: > { %s13_s16 = sadd.s32 1, %s393_s16   ;;  %s482_s12 = smov %s385_s14 }
  0x96   : > { %p10_p8 = scmp.ge.s32.totalorder %s13_s16, 6   ;;  %s483_s13 = smov %s389_s15 }
  0x97   : > { %s484_s14 = smov %s487_s17  ;;  %s485_s15 = smov %s491_s18 }
  0x98   :  { %12 = sbr.rel (!%p10_p8) target bundleno = 3 (0x3), region = 62 }

// kernel: conv_block_forward.2
= control target key start
LH: loop header
LB: loop body
LE: loop exit
PB: predicated region body
PF: predicated region fallthrough
CT: control target
= control target key end

     0   :  { %s722_s15 = smov 0   ;;  %s724_s16 = smov 0   ;;  %s831_s0 = inlined_call_operand.vmem [shape: bf16[36,512], index: 0, kind: input, shape index: {}]   ;;  %s832_s1 = inlined_call_operand.vmem [shape: bf16[8,36], index: 1, kind: input, shape index: {}]   ;;  %s833_s2 = inlined_call_operand.vmem [shape: bf16[8,512], index: 2, kind: output, shape index: {0}]   ;;  %s834_s3 = inlined_call_operand.vmem [shape: f32[2,8,1], index: 3, kind: output, shape index: {1}]   ;;  %s835_s4 = inlined_call_operand.vmem [shape: f32[2,8,1], index: 4, kind: output, shape index: {2}]  }
   0x1   :  { %s726_s17 = smov 0   ;;  %s728_s18 = smov 0  }
   0x2   :  { %s730_s19 = smov 0   ;;  %s732_s20 = smov 0  }
   0x3   :  { %s734_s21 = smov 0  }
   0x4 LB: > { %s24_s22 = sadd.s32 1, %s684_s19  ;;  %s27_s23 = sadd.s32 1, %s688_s20  ;;  %s692_s21 = sphi %s734_s21, %s15_s21   ;;  %s688_s20 = sphi %s732_s20, %s841_s20   ;;  %s684_s19 = sphi %s730_s19, %s840_s19   ;;  %s680_s18 = sphi %s728_s18, %s839_s18   ;;  %s676_s17 = sphi %s726_s17, %s838_s17   ;;  %s672_s16 = sphi %s724_s16, %s837_s16   ;;  %s668_s15 = sphi %s722_s15, %s836_s15  }
   0x5   : > { %p25_p0 = scmp.ge.s32.totalorder %s24_s22, 2  ;;  %p45_p1 = scmp.ne.s32.totalorder %s672_s16, %s668_s15 }
   0x6   : > { %p46_p2 = scmp.eq.s32.totalorder %s692_s21, 0  ;;  %s540_s24 = sshll.u32 %s688_s20, 1 }
   0x7   : > { %s843_s22 = smov (%p25_p0, %s24_s22), 0  ;;  %s845_s23 = smov (!%p25_p0, %s27_s23), %s688_s20 }
   0x8   : > { %p29_p3 = scmp.ge.s32.totalorder %s845_s23, 2  ;;  %p47_p4 = por %p46_p2, %p45_p1 }
   0x9   : > { %s32_s25 = sadd.s32 %s684_s19, %s540_s24  ;;  %s38_s29 = sadd.s32 1, %s672_s16 }
   0xa   : > { %s847_s23 = smov (%p29_p3, %s845_s23), 0  ;;  %p545_p6 = scmp.ge.s32.totalorder %s692_s21, 4 }
   0xb   : > { %s541_s26 = sshll.u32 %s847_s23, 1 }
   0xc   : > { %s34_s27 = sadd.s32 %s541_s26, %s843_s22  ;;  %177 = sbr.rel (%p545_p6) target bundleno = 24 (0x18), region = 20 }
   0xd   : > { %s35_s28 = ssub.s32 %s32_s25, %s34_s27 }
   0xe   : > { %p36_p5 = scmp.eq.s32.totalorder %s35_s28, 0 }
  0x10   : > { %s773_s30 = scalar_select %p36_p5, %s672_s16, %s38_s29  }
  0x11   : > { %180 = sbr.rel (!%p47_p4) target bundleno = 24 (0x18), region = 24  ;;  %s182_s5 = sand.u32 (%p47_p4), 1, %s672_s16  }
  0x12   : > { %s547_s6 = sshll.u32 (%p47_p4), %s32_s25, 2  ;;  %s574_s7 = smul.u32 (%p47_p4), 20, %s182_s5 }
  0x13   : > { %s188_s10 = scalar_lea.vmem (%p47_p4), %s831_s0, %s547_s6 }
  0x14   : > { %v205_v0 = vld [vmem:[%s188_s10] sm:$0xf] (%p47_p4)  ;;  %v207_v1 = vld [vmem:[%s188_s10 + $0x10] sm:$0xf] (%p47_p4)  ;;  %s184_s11 = scalar_lea.vmem (%p47_p4), [#allocation2], %s574_s7 }
  0x15   : > { %v209_v2 = vld [vmem:[%s188_s10 + $0x20] sm:$0xf] (%p47_p4)  ;;  %v211_v3 = vld [vmem:[%s188_s10 + $0x30] sm:$0xf] (%p47_p4)  ;;  %206 = vst [vmem:[%s184_s11] sm:$0xf] (%p47_p4), %v205_v0 }
  0x16   : > { %v213_v4 = vld [vmem:[%s188_s10 + $0x40] sm:$0xf]  ;;  %208 = vst [vmem:[%s184_s11 + $0x4] sm:$0xf] %v207_v1  ;;  %210 = vst [vmem:[%s184_s11 + $0x8] sm:$0xf] %v209_v2 }
  0x17   : > { %212 = vst [vmem:[%s184_s11 + $0xc] sm:$0xf] %v211_v3  ;;  %214 = vst [vmem:[%s184_s11 + $0x10] sm:$0xf] %v213_v4 }
  0x18 PF: > { %p548_p7 = scmp.ge.s32.totalorder %s692_s21, 1  ;;  %p247_p8 = scmp.lt.s32.totalorder %s692_s21, 5 }
  0x1a   : > { %p248_p9 = pnand %p548_p7, %p247_p8 }
  0x1b   : > { %p298_p10 = scmp.lt.s32.totalorder (!%p248_p9), %s680_s18, 1  ;;  %s254_s12 = sand.u32 (!%p248_p9), 1, %s668_s15  }
  0x1c   : > { %251 = sbr.rel (%p248_p9) target bundleno = 393 (0x189), region = 65  ;;  %s549_s8 = sshll.u32 (!%p248_p9), %s680_s18, 1 }
  0x1d   : > { %s575_s13 = smul.u32 (!%p248_p9), 20, %s254_s12  ;;  %s291_s9 = sadd.s32 (!%p248_p9), %s676_s17, %s549_s8 }
  0x1e   : > { %p292_p11 = scmp.lt.s32.totalorder (!%p248_p9), %s291_s9, 3  ;;  %p557_p12 = scmp.ne.s32.totalorder (!%p248_p9), %s676_s17, 0 }
  0x1f   : > { %s256_s25 = scalar_lea.vmem (!%p248_p9), [#allocation2], %s575_s13 }
  0x21   : > { %v694_v5 = vmov 0.0   ;;  %vm695_vm0 = vmmov 0   ;;  %s299_s14 = scalar_select %p298_p10, %s680_s18, 1  ;;  %vm332_vm1 = vcmask 1041408   ;;  %v636_v8 = vld [vmem:[%s256_s25 + $0x8] sm:$0xff]   ;;  %v637_v9 = vld [vmem:[%s256_s25] sm:$0xff]  }
  0x22   : > { %564 = vmatprep.subr.bf16.mxu0 %v694_v5  ;;  %570 = vmatprep.mubr.msk.bf16.mxu0 %vm695_vm0, %v694_v5  ;;  %v635_v6 = vld [vmem:[%s256_s25 + $0x10] ss:$0 sps:$4 sm:$0x33]   ;;  %v307_v10 = vld [vmem:[%s832_s1] sm:$0xf]  ;;  %vm328_vm2 = vcmask 293888  }
  0x23   : > { %s551_s24 = sshll.u32 %s299_s14, 3  ;;  %v334_v7 = vsel %vm332_vm1, %v635_v6, 0  ;;  %s849_s9 = smov (!%p292_p11, %s291_s9), 3 }
  0x24   : > { %s788_s28 = scalar_lea.vmem %s834_s3, %s551_s24  ;;  %s793_s15 = scalar_lea.vmem %s835_s4, %s551_s24  ;;  %565 = vmatpush3.bf16.msra.mxu0 %v334_v7 }
  0x25   : > { %566 = vmatprep.subr.bf16.mxu0 %v694_v5  ;;  %s550_s10 = sshll.u32 %s849_s9, 2 }
  0x26   : > { %s295_s13 = scalar_lea.vmem %s833_s2, %s550_s10 }
  0x28   : > { %567 = vmatpush3.bf16.msra.mxu0 %v636_v8 }
  0x29   : > { %568 = vmatprep.subr.bf16.mxu0 %v694_v5 }
  0x2c   : > { %569 = vmatpush3.bf16.msra.mxu0 %v637_v9 }
  0x2f   : > { %571 = vmatmul.mubr.msk.bf16.vlgmr.msra.gmra.mxu0 %vm328_vm2, %v307_v10 }
  0xef   : > { %v370_v11 = vpop.f32.mrf.mxu0 }
  0xf0   : > { %v376_v12 = vpack.c.bf16 %v370_v11, %v370_v11 }
  0xf1   : > { %v572_v13 = vpop.f32.mrf.mxu0  ;;  %381 = sbr.rel (%p557_p12) target bundleno = 248 (0xf8), region = 73 }
  0xf2   : > { %377 = vst [vmem:[%s295_s13] sm:$0xf] %v376_v12 }
  0xf3   : > { %v373_v14 = vpop.f32.mrf.mxu0 }
  0xf5   : > { %v573_v15 = vpop.f32.mrf.mxu0 }
  0xf6   : > { %vm382_vm3 = vcmask 7168   ;;  %v696_v16 = vmov 0.0  }
  0xf7   : > { %383 = vst.msk [vmem:[%s788_s28] sm:$0xff] %vm382_vm3, %v696_v16  ;;  %384 = vst.msk [vmem:[%s793_s15] sm:$0xff] %vm382_vm3, %v696_v16 }
  0xf8 PF: > { %386 = vadd.xlane.f32.xlu0 %v370_v11  ;;  %v392_v17 = vmul.f32 %v370_v11, %v370_v11  ;;  %vm389_vm4 = vcmask 7168  }
  0xfc   : > { %393 = vadd.xlane.f32.xlu0 %v392_v17 }
  0xfe   : > { %v385_v18 = vld [vmem:[%s788_s28] sm:$0xff] }
  0xff   : > { %v391_v21 = vld [vmem:[%s793_s15] sm:$0xff] }
 0x181   : > { %v387_v19 = vpop.xlane.xlu0 %386 }
 0x182   : > { %v388_v20 = vadd.f32 %v387_v19, %v385_v18 }
 0x184   : > { %390 = vst.msk [vmem:[%s788_s28] sm:$0xff] %vm389_vm4, %v388_v20 }
 0x185   : > { %v394_v22 = vpop.xlane.xlu0 %393 }
 0x186   : > { %v395_v23 = vadd.f32 %v394_v22, %v391_v21 }
 0x188   : > { %396 = vst.msk [vmem:[%s793_s15] sm:$0xff] %vm389_vm4, %v395_v23 }
 0x189 PF: > { %s15_s21 = sadd.s32 1, %s692_s21   ;;  %s836_s15 = smov %s672_s16 }
 0x18a   : > { %p12_p13 = scmp.ge.s32.totalorder %s15_s21, 6   ;;  %s837_s16 = smov %s773_s30 }
 0x18b   : > { %s838_s17 = smov %s684_s19  ;;  %s839_s18 = smov %s688_s20 }
 0x18c   : > { %s840_s19 = smov %s843_s22  ;;  %s841_s20 = smov %s847_s23 }
 0x18d   :  { %14 = sbr.rel (!%p12_p13) target bundleno = 4 (0x4), region = 132 }

</bundles_post_ra>
